<compile_context>
chip_gen: v7x
topology: tpu7x:2x2x1
jax: 0.10.0
libtpu: 0.0.40
codegen_flags: <defaults>
</compile_context>

<pallas_src>
import functools

import jax
import jax.numpy as jnp
from jax.experimental import pallas as pl
from jax.experimental.pallas import tpu as pltpu

D_IN, H, D_OUT = 2, 4, 1
LANES = 128
TILE_ROWS_MAX = 2048  # rows of 128 samples per grid step (2 MiB live input/step)

# Deterministic weights exactly as in the PyTorch __init__ (linear1.weight = W1.T,
# linear2.weight = W2.T; here W1 is (in=2, hidden=4) and W2 is (hidden=4,)).
W1 = ((0.6, -0.5, -0.2, 0.1),
      (0.5,  0.5, -0.6, -0.6))
W2 = (1.0, -1.0, 1.0, -1.0)
_W2_SUM = sum(W2)  # == 0.0 -> the 0.5 offsets of the tanh identity cancel exactly


def teacher_kernel(x_ref, o_ref):
    # x_ref: (2, TILE_ROWS, 128)  -- x_ref[0]=feature 0, x_ref[1]=feature 1, dense
    # o_ref: (TILE_ROWS, 128)     -- dense lane-major output
    x0 = x_ref[0]
    x1 = x_ref[1]
    y = jnp.zeros_like(x0)
    # Fully unrolled 2->4->1 MLP on the VPU; weights are compile-time constants.
    # sigmoid(z) = 0.5 + 0.5*tanh(z/2); sum_j W2[j]*0.5 folds into a constant.
    for j in range(H):
        z = W1[0][j] * x0 + W1[1][j] * x1
        y = y + (0.5 * W2[j]) * jnp.tanh(0.5 * z)  # one EUP tanh per hidden unit
    if _W2_SUM != 0.0:  # constant term from the tanh identity (zero for this teacher)
        y = y + 0.5 * _W2_SUM
    o_ref[...] = y.astype(o_ref.dtype)


def _round_up(v, m):
    return ((v + m - 1) // m) * m


@functools.partial(jax.jit, static_argnames=())
def teacher_network(x):
    """x: (N, 2) float -> (N, 1) float32, identical semantics to TeacherNetwork.forward."""
    n = x.shape[0]
    n_rows = pl.cdiv(n, LANES)  # rows of 128 samples

    # Tile selection: multiple of 8 rows (sublane tiling), capped at TILE_ROWS_MAX,
    # and (when the batch allows) split into >= 2 grid steps so v7x can use both TCs.
    tile_rows = max(8, min(TILE_ROWS_MAX, _round_up(pl.cdiv(n_rows, 2), 8)))
    rows_pad = pl.cdiv(n_rows, tile_rows) * tile_rows
    n_pad = rows_pad * LANES

    # Cast + transpose + pad + reshape fuse into one copy under jit; the kernel then
    # sees fully dense (2, R, 128) blocks (batch on lanes AND sublanes).
    x_t = x.astype(jnp.float32).T                         # (2, N)
    x_t = jnp.pad(x_t, ((0, 0), (0, n_pad - n)))          # (2, N_pad)
    x_t = x_t.reshape(D_IN, rows_pad, LANES)              # (2, R, 128)

    out = pl.pallas_call(
        teacher_kernel,
        out_shape=jax.ShapeDtypeStruct((rows_pad, LANES), jnp.float32),
        grid_spec=pltpu.PrefetchScalarGridSpec(
            num_scalar_prefetch=0,
            grid=(rows_pad // tile_rows,),
            in_specs=[
                pl.BlockSpec((D_IN, tile_rows, LANES), lambda i: (0, i, 0)),
            ],
            out_specs=pl.BlockSpec((tile_rows, LANES), lambda i: (i, 0)),
        ),
        compiler_params=pltpu.CompilerParams(
            dimension_semantics=("parallel",),
            # Double-buffered working set is <= ~6 MiB with the caps above; 32 MiB
            # is safe on every generation (v5e/v6e physical 128 MiB, v7x 64 MiB).
            vmem_limit_bytes=32 * 1024 * 1024,
        ),
    )(x_t)

    # Padded tail samples are discarded here (and are harmless: the W2 terms cancel).
    return out.reshape(n_pad)[:n].reshape(n, D_OUT)


def _reference(x):
    # Plain-JAX reference: same math as the PyTorch module (exact sigmoid form).
    w1 = jnp.array(W1, dtype=jnp.float32)                    # (2, 4)
    w2 = jnp.array(W2, dtype=jnp.float32).reshape(H, D_OUT)  # (4, 1)
    return jax.nn.sigmoid(x.astype(jnp.float32) @ w1) @ w2


if __name__ == "__main__":
    key = jax.random.PRNGKey(0)

    # Small primary check (batch=8), plus a non-multiple-of-128 batch to exercise
    # padding / reshape / multi-row tiling.
    for n in (8, 300):
        k, key = jax.random.split(key)
        x = jax.random.normal(k, (n, D_IN), dtype=jnp.float32)

        y = teacher_network(x)
        jax.block_until_ready(y)

        y_ref = _reference(x)
        assert y.shape == (n, D_OUT), (y.shape, n)
        assert jnp.allclose(y, y_ref, atol=1e-5, rtol=1e-5), (
            f"mismatch at n={n}: max abs err {jnp.max(jnp.abs(y - y_ref))}")

    print("KERNEL_OK")
</pallas_src>

<mosaic_0001>
module attributes {stable_mosaic.version = 11 : i64} {
  func.func @teacher_kernel(%arg0: i32, %arg1: memref<2x8x128xf32, #tpu.memory_space<vmem>>, %arg2: memref<8x128xf32, #tpu.memory_space<vmem>>) attributes {dimension_semantics = [#tpu.dimension_semantics<parallel>], iteration_bounds = array<i64: 1>, scalar_prefetch = 0 : i64, scratch_operands = 0 : i64, tpu.core_type = #tpu.core_type<tc>, window_params = [{transform_indices = @transform_0, window_bounds = array<i64: 2, 8, 128>}, {transform_indices = @transform_1, window_bounds = array<i64: 8, 128>}]} {
    %c0 = arith.constant 0 : index
    %c0_0 = arith.constant 0 : index
    %c0_1 = arith.constant 0 : index
    %0 = vector.load %arg1[%c0, %c0_0, %c0_1] : memref<2x8x128xf32, #tpu.memory_space<vmem>>, vector<1x8x128xf32>
    %1 = vector.shape_cast %0 : vector<1x8x128xf32> to vector<8x128xf32>
    %c1 = arith.constant 1 : index
    %c0_2 = arith.constant 0 : index
    %c0_3 = arith.constant 0 : index
    %2 = vector.load %arg1[%c1, %c0_2, %c0_3] : memref<2x8x128xf32, #tpu.memory_space<vmem>>, vector<1x8x128xf32>
    %3 = vector.shape_cast %2 : vector<1x8x128xf32> to vector<8x128xf32>
    %cst = arith.constant 0.000000e+00 : f32
    %4 = vector.broadcast %cst : f32 to vector<8x128xf32>
    %cst_4 = arith.constant 6.000000e-01 : f32
    %5 = vector.broadcast %cst_4 : f32 to vector<8x128xf32>
    %6 = arith.mulf %5, %1 : vector<8x128xf32>
    %cst_5 = arith.constant 5.000000e-01 : f32
    %7 = vector.broadcast %cst_5 : f32 to vector<8x128xf32>
    %8 = arith.mulf %7, %3 : vector<8x128xf32>
    %9 = arith.addf %6, %8 : vector<8x128xf32>
    %cst_6 = arith.constant 5.000000e-01 : f32
    %10 = vector.broadcast %cst_6 : f32 to vector<8x128xf32>
    %11 = arith.mulf %10, %9 : vector<8x128xf32>
    %12 = math.tanh %11 : vector<8x128xf32>
    %cst_7 = arith.constant 5.000000e-01 : f32
    %13 = vector.broadcast %cst_7 : f32 to vector<8x128xf32>
    %14 = arith.mulf %13, %12 : vector<8x128xf32>
    %15 = arith.addf %4, %14 : vector<8x128xf32>
    %cst_8 = arith.constant -5.000000e-01 : f32
    %16 = vector.broadcast %cst_8 : f32 to vector<8x128xf32>
    %17 = arith.mulf %16, %1 : vector<8x128xf32>
    %cst_9 = arith.constant 5.000000e-01 : f32
    %18 = vector.broadcast %cst_9 : f32 to vector<8x128xf32>
    %19 = arith.mulf %18, %3 : vector<8x128xf32>
    %20 = arith.addf %17, %19 : vector<8x128xf32>
    %cst_10 = arith.constant 5.000000e-01 : f32
    %21 = vector.broadcast %cst_10 : f32 to vector<8x128xf32>
    %22 = arith.mulf %21, %20 : vector<8x128xf32>
    %23 = math.tanh %22 : vector<8x128xf32>
    %cst_11 = arith.constant -5.000000e-01 : f32
    %24 = vector.broadcast %cst_11 : f32 to vector<8x128xf32>
    %25 = arith.mulf %24, %23 : vector<8x128xf32>
    %26 = arith.addf %15, %25 : vector<8x128xf32>
    %cst_12 = arith.constant -2.000000e-01 : f32
    %27 = vector.broadcast %cst_12 : f32 to vector<8x128xf32>
    %28 = arith.mulf %27, %1 : vector<8x128xf32>
    %cst_13 = arith.constant -6.000000e-01 : f32
    %29 = vector.broadcast %cst_13 : f32 to vector<8x128xf32>
    %30 = arith.mulf %29, %3 : vector<8x128xf32>
    %31 = arith.addf %28, %30 : vector<8x128xf32>
    %cst_14 = arith.constant 5.000000e-01 : f32
    %32 = vector.broadcast %cst_14 : f32 to vector<8x128xf32>
    %33 = arith.mulf %32, %31 : vector<8x128xf32>
    %34 = math.tanh %33 : vector<8x128xf32>
    %cst_15 = arith.constant 5.000000e-01 : f32
    %35 = vector.broadcast %cst_15 : f32 to vector<8x128xf32>
    %36 = arith.mulf %35, %34 : vector<8x128xf32>
    %37 = arith.addf %26, %36 : vector<8x128xf32>
    %cst_16 = arith.constant 1.000000e-01 : f32
    %38 = vector.broadcast %cst_16 : f32 to vector<8x128xf32>
    %39 = arith.mulf %38, %1 : vector<8x128xf32>
    %cst_17 = arith.constant -6.000000e-01 : f32
    %40 = vector.broadcast %cst_17 : f32 to vector<8x128xf32>
    %41 = arith.mulf %40, %3 : vector<8x128xf32>
    %42 = arith.addf %39, %41 : vector<8x128xf32>
    %cst_18 = arith.constant 5.000000e-01 : f32
    %43 = vector.broadcast %cst_18 : f32 to vector<8x128xf32>
    %44 = arith.mulf %43, %42 : vector<8x128xf32>
    %45 = math.tanh %44 : vector<8x128xf32>
    %cst_19 = arith.constant -5.000000e-01 : f32
    %46 = vector.broadcast %cst_19 : f32 to vector<8x128xf32>
    %47 = arith.mulf %46, %45 : vector<8x128xf32>
    %48 = arith.addf %37, %47 : vector<8x128xf32>
    %c0_20 = arith.constant 0 : index
    %c0_21 = arith.constant 0 : index
    %49 = vector.load %arg2[%c0_20, %c0_21] : memref<8x128xf32, #tpu.memory_space<vmem>>, vector<8x128xf32>
    tpu.vector_store %arg2[%c0_20, %c0_21], %48 {strides = array<i32>} : memref<8x128xf32, #tpu.memory_space<vmem>>, vector<8x128xf32>,
    return
  }
  func.func @transform_0(%arg0: i32) -> (i32, i32, i32) {
    %c0_i32 = arith.constant 0 : i32
    %c0_i32_0 = arith.constant 0 : i32
    %c0_i32_1 = arith.constant 0 : i32
    return %c0_i32, %arg0, %c0_i32_0 : i32, i32, i32
  }
  func.func @transform_1(%arg0: i32) -> (i32, i32) {
    %c0_i32 = arith.constant 0 : i32
    %c0_i32_0 = arith.constant 0 : i32
    return %arg0, %c0_i32 : i32, i32
  }
}

</mosaic_0001>

<bundles_post_ra>
// kernel: teacher_network.1
= control target key start
LH: loop header
LB: loop body
LE: loop exit
PB: predicated region body
PF: predicated region fallthrough
CT: control target
= control target key end

     0   :  { %s70_s0 = inlined_call_operand.vmem [shape: f32[2,8,128], index: 0, kind: input, shape index: {}]   ;;  %s71_s1 = inlined_call_operand.vmem [shape: f32[8,128], index: 1, kind: output, shape index: {}]  }
   0x1   :  { %v8_v0 = vld [vmem:[%s70_s0] sm:$0xff]  ;;  %v42_v1 = vld [vmem:[%s70_s0 + $0x8] sm:$0xff] }
   0x2   :  { %v11_v2 = vmul.f32 0.6, %v8_v0  ;;  %v12_v3 = vmul.f32 0.5, %v42_v1  ;;  %v18_v4 = vmul.f32 -0.5, %v8_v0  ;;  %v24_v5 = vmul.f32 -0.2, %v8_v0 }
   0x3   :  { %v25_v6 = vmul.f32 -0.6, %v42_v1  ;;  %v31_v7 = vmul.f32 0.1, %v8_v0 }
   0x4   :  { %v13_v8 = vadd.f32 %v12_v3, %v11_v2  ;;  %v19_v9 = vadd.f32 %v18_v4, %v12_v3 }
   0x5   :  { %v26_v10 = vadd.f32 %v25_v6, %v24_v5  ;;  %v32_v11 = vadd.f32 %v31_v7, %v25_v6 }
   0x6   :  { %v14_v12 = vmul.f32 0.5, %v13_v8  ;;  %v20_v13 = vmul.f32 0.5, %v19_v9 }
   0x7   :  { %v27_v14 = vmul.f32 0.5, %v26_v10  ;;  %v33_v15 = vmul.f32 0.5, %v32_v11 }
   0x8   :  { %43 = vtanh.f32 %v14_v12 }
   0x9   :  { %45 = vtanh.f32 %v20_v13 }
   0xa   :  { %47 = vtanh.f32 %v27_v14 }
   0xb   :  { %49 = vtanh.f32 %v33_v15 }
  0x12   :  { %v44_v16 = vpop.eup %43 }
  0x13   :  { %v46_v17 = vpop.eup %45  ;;  %v16_v18 = vmul.f32 0.5, %v44_v16 }
  0x14   :  { %v48_v19 = vpop.eup %47  ;;  %v22_v20 = vmul.f32 -0.5, %v46_v17 }
  0x15   :  { %v50_v21 = vpop.eup %49  ;;  %v29_v22 = vmul.f32 0.5, %v48_v19 }
  0x16   :  { %v23_v23 = vadd.f32 %v22_v20, %v16_v18  ;;  %v35_v24 = vmul.f32 -0.5, %v50_v21 }
  0x18   :  { %v30_v25 = vadd.f32 %v29_v22, %v23_v23 }
  0x1a   :  { %v36_v26 = vadd.f32 %v35_v24, %v30_v25 }
  0x1c   :  { %37 = vst [vmem:[%s71_s1] sm:$0xff] %v36_v26 }

</bundles_post_ra>
